<compile_context>
chip_gen: v6e
topology: v6e:2x2x1
jax: 0.10.0
libtpu: 0.0.40
codegen_flags: <defaults>
</compile_context>

<pallas_src>
import jax
import jax.numpy as jnp
from jax.experimental import pallas as pl
from jax.experimental.pallas import tpu as pltpu

LANE = 128

# dtypes we confidently lower through Mosaic; everything else falls back to XLA.
_PALLAS_OK_DTYPES = frozenset({
    "bfloat16", "float16",
    "int8", "int16", "int32",
    "uint8", "uint16", "uint32",
    "float8_e4m3fn", "float8_e5m2",
})

# Below this many bytes of total (input + f32 output) traffic, XLA's fused
# convert beats pallas_call dispatch + ~0.35us/step fixed cost.
_MIN_PALLAS_BYTES = 1 << 20


def _cast_kernel(x_ref, o_ref):
    # Elementwise cast to float32 on the VPU; DMA-bound, nothing else needed.
    o_ref[...] = x_ref[...].astype(jnp.float32)


def _chip_block_config():
    """Returns (block byte budget [double-buffered in+out], vmem_limit_bytes, split_for_two_tcs)."""
    vmem = None
    try:
        vmem = pltpu.get_tpu_info().vmem_capacity_bytes
    except Exception:  # no TPU info available at trace time -> conservative defaults
        vmem = None
    if vmem is not None and vmem <= (64 << 20):
        # v7x-class: 64 MiB VMEM per TC, ~3.2 TB/s HBM, 2 TCs/chip.
        # Big blocks matter most here (0.35us/step is ~25% of a 4 MiB step);
        # 32 MiB of double-buffered block buffers needs scoped VMEM raised to
        # 48 MiB (still 16 MiB headroom under the 64 MiB physical VMEM).
        return 32 << 20, 48 << 20, True
    # v5e / v6e: single TC, 128 MiB physical VMEM.
    # 16 MiB of block buffers = 8192 rows for an int32 input (per review);
    # vmem_limit=24 MiB keeps it safe on v5e's 16 MiB default scoped VMEM too.
    return 16 << 20, 24 << 20, False


def _choose_block_rows(rows, in_itemsize, budget_bytes, split_for_two_tcs):
    # Bytes per row of the (rows, 128) slab, double-buffered input + f32 output.
    per_row_bytes = 2 * (in_itemsize + 4) * LANE
    # Multiple of 32 rows keeps bf16/int8/fp8 sublane packing legal.
    max_rows = max(32, (budget_bytes // per_row_bytes) // 32 * 32)
    if rows > max_rows:
        return max_rows
    # Whole array fits in one block.
    if split_for_two_tcs and rows >= 64:
        # Only split when each half carries >= ~1 MiB of in+out traffic, so
        # both v7x TensorCores get meaningful work without small-input overhead.
        if rows * (in_itemsize + 4) * LANE >= (2 << 20):
            half = -(-((rows + 1) // 2) // 32) * 32
            return min(half, rows)
    # Single-TC chips (v5e/v6e): never split a block that already fits.
    return rows


def float_cast(x: jax.Array, *, min_pallas_bytes: int = _MIN_PALLAS_BYTES) -> jax.Array:
    """Equivalent of torch.Tensor.float(): cast any dtype to float32."""
    # Identity: torch .float() returns the tensor unchanged for float32.
    if x.dtype == jnp.float32:
        return x

    orig_shape = x.shape
    n = x.size
    if n == 0:
        return x.astype(jnp.float32)

    in_itemsize = jnp.dtype(x.dtype).itemsize

    # Dtype / tiny-input fallbacks: let XLA's fused convert handle them.
    if jnp.dtype(x.dtype).name not in _PALLAS_OK_DTYPES:
        return x.astype(jnp.float32)
    if n * (in_itemsize + 4) < min_pallas_bytes:
        return x.astype(jnp.float32)

    x_flat = x.reshape(-1)
    rem = n % LANE
    n_aligned = n - rem
    if n_aligned == 0:
        # Can only happen when min_pallas_bytes is overridden to ~0.
        return x.astype(jnp.float32)

    prefix = x_flat if rem == 0 else x_flat[:n_aligned]
    rows = n_aligned // LANE
    x2d = prefix.reshape(rows, LANE)

    budget_bytes, vmem_limit, split_for_two_tcs = _chip_block_config()
    block_rows = _choose_block_rows(rows, in_itemsize, budget_bytes, split_for_two_tcs)
    grid = (pl.cdiv(rows, block_rows),)

    out2d = pl.pallas_call(
        _cast_kernel,
        out_shape=jax.ShapeDtypeStruct((rows, LANE), jnp.float32),
        grid=grid,
        in_specs=[pl.BlockSpec((block_rows, LANE), lambda i: (i, 0))],
        out_specs=pl.BlockSpec((block_rows, LANE), lambda i: (i, 0)),
        compiler_params=pltpu.CompilerParams(
            dimension_semantics=("parallel",),
            vmem_limit_bytes=vmem_limit,
        ),
    )(x2d)

    out_flat = out2d.reshape(-1)
    if rem != 0:
        # Ragged tail (<128 elems) cast by XLA; the concatenate is the single
        # remaining output-sized HBM copy on this (rare) non-aligned path.
        tail_f32 = x_flat[n_aligned:].astype(jnp.float32)
        out_flat = jnp.concatenate([out_flat, tail_f32])
    return out_flat.reshape(orig_shape)


if __name__ == "__main__":
    key = jax.random.PRNGKey(0)

    # Canonical NCHW image-like batch of int32 values (module casts to f32).
    # At this size the tiny-input XLA fallback path is taken.
    x = jax.random.randint(key, (2, 4, 16, 16), minval=0, maxval=256,
                           dtype=jnp.int32)
    y = jax.block_until_ready(float_cast(x))
    assert y.dtype == jnp.float32 and y.shape == x.shape
    assert jnp.array_equal(y, x.astype(jnp.float32))

    # Same small input, but force the Pallas kernel path.
    y_k = jax.block_until_ready(float_cast(x, min_pallas_bytes=0))
    assert y_k.dtype == jnp.float32
    assert jnp.array_equal(y_k, x.astype(jnp.float32))

    # Moderate bf16 input that naturally exceeds the fallback threshold
    # (1 MiB in + 2 MiB out) and exercises the byte-budget block sizing.
    xb = jax.random.normal(jax.random.PRNGKey(1), (4, 4, 128, 128),
                           dtype=jnp.bfloat16)
    yb = jax.block_until_ready(float_cast(xb))
    assert yb.dtype == jnp.float32
    assert jnp.array_equal(yb, xb.astype(jnp.float32))

    # float32 identity short-circuit.
    xf = jax.random.normal(jax.random.PRNGKey(2), (2, 4, 16, 16),
                           dtype=jnp.float32)
    yf = jax.block_until_ready(float_cast(xf))
    assert yf.dtype == jnp.float32 and jnp.array_equal(yf, xf)

    # Ragged size (not a multiple of 128), forced through the kernel so the
    # aligned-prefix + XLA-tail path is exercised.
    xr = jax.random.randint(jax.random.PRNGKey(3), (3, 5, 11),
                            minval=-10, maxval=10, dtype=jnp.int32)
    yr = jax.block_until_ready(float_cast(xr, min_pallas_bytes=0))
    assert yr.dtype == jnp.float32
    assert jnp.array_equal(yr, xr.astype(jnp.float32))

    # Unsupported-dtype (bool) fallback matches torch semantics via XLA astype.
    xbool = jax.random.bernoulli(jax.random.PRNGKey(4), 0.5, (2, 4, 16, 16))
    ybool = jax.block_until_ready(float_cast(xbool))
    assert ybool.dtype == jnp.float32
    assert jnp.array_equal(ybool, xbool.astype(jnp.float32))

    print("KERNEL_OK")
</pallas_src>

<mosaic_0001>
module attributes {stable_mosaic.version = 11 : i64} {
  func.func @_cast_kernel(%arg0: i32, %arg1: memref<16x128xi32, #tpu.memory_space<vmem>>, %arg2: memref<16x128xf32, #tpu.memory_space<vmem>>) attributes {dimension_semantics = [#tpu.dimension_semantics<parallel>], iteration_bounds = array<i64: 1>, scalar_prefetch = 0 : i64, scratch_operands = 0 : i64, tpu.core_type = #tpu.core_type<tc>, window_params = [{transform_indices = @transform_0, window_bounds = array<i64: 16, 128>}, {transform_indices = @transform_1, window_bounds = array<i64: 16, 128>}]} {
    %c0 = arith.constant 0 : index
    %c0_0 = arith.constant 0 : index
    %0 = vector.load %arg1[%c0, %c0_0] : memref<16x128xi32, #tpu.memory_space<vmem>>, vector<16x128xi32>
    %1 = arith.sitofp %0 : vector<16x128xi32> to vector<16x128xf32>
    %c0_1 = arith.constant 0 : index
    %c0_2 = arith.constant 0 : index
    %2 = vector.load %arg2[%c0_1, %c0_2] : memref<16x128xf32, #tpu.memory_space<vmem>>, vector<16x128xf32>
    tpu.vector_store %arg2[%c0_1, %c0_2], %1 {strides = array<i32>} : memref<16x128xf32, #tpu.memory_space<vmem>>, vector<16x128xf32>,
    return
  }
  func.func @transform_0(%arg0: i32) -> (i32, i32) {
    %c0_i32 = arith.constant 0 : i32
    %c0_i32_0 = arith.constant 0 : i32
    return %arg0, %c0_i32 : i32, i32
  }
  func.func @transform_1(%arg0: i32) -> (i32, i32) {
    %c0_i32 = arith.constant 0 : i32
    %c0_i32_0 = arith.constant 0 : i32
    return %arg0, %c0_i32 : i32, i32
  }
}

</mosaic_0001>

<bundles_post_ra>
// kernel: tpu_custom_call.1
= control target key start
LH: loop header
LB: loop body
LE: loop exit
PB: predicated region body
PF: predicated region fallthrough
CT: control target
= control target key end

     0   :  { %6 = vsyncpa [#allocation3], 0  ;;  %s114_s0 = inlined_call_operand.hbm [shape: s32[16,128], index: 0, kind: input, shape index: {}]   ;;  %s115_s1 = inlined_call_operand.hbm [shape: f32[16,128], index: 1, kind: output, shape index: {}]  }
   0x1   :  { %7 = vsyncpa [#allocation4], 0  ;;  %s94_s6 = smov [#allocation2]  }
   0x2   :  { %s13_s7 = sshll.u32 %s94_s6, 4  ;;  %s14_s7 = int_to_ptr.vmem [resolvable:$true] %s13_s7 }
   0x3   :  { %s58_s8 = scalar_lea.vmem %s14_s7, 256  ;;  %p63_p1 = scmp.lt.s32.totalorder %s14_s7, %s14_s7 }
   0x4   :  { %p59_p0 = scmp.ne.s32.totalorder %s14_s7, %s58_s8  ;;  %p64_p2 = scmp.lt.s32.totalorder %s58_s8, %s58_s8 }
   0x6   :  { %p65_p3 = por %p64_p2, %p63_p1 }
   0x8   :  { %p66_p4 = pnand %p65_p3, %p59_p0 }
   0xa   :  { %69 = shalt.err (!%p66_p4)
}
   0xb   :  { %s95_s9 = smov 128   ;;  %s96_s10 = smov 8  }
   0xc   :  { %19 = dma.hbm_to_vmem [thread:$0]  %s114_s0, 256, %s14_s7, [#allocation3], %s95_s9, %s95_s9, %s96_s10  }
   0xd   :  { %90 = dma.done.wait [#allocation3], 256  }
   0xe   :  { %91 = vsyncadd [#allocation3], 4294967040  ;;  %s97_s13 = smov [#allocation5]   ;;  %v23_v0 = vld [vmem:[#allocation2] sm:$0xff]  ;;  %v24_v1 = vld [vmem:[#allocation2 + $0x8] sm:$0xff] }
   0xf   :  { %s34_s14 = sshll.u32 %s97_s13, 4  ;;  %v25_v2 = vcvt.s32.f32 %v23_v0  ;;  %v26_v3 = vcvt.s32.f32 %v24_v1  ;;  %s35_s14 = int_to_ptr.vmem [resolvable:$true] %s34_s14 }
  0x10   :  { %s70_s15 = scalar_lea.vmem %s35_s14, 256  ;;  %p75_p6 = scmp.lt.s32.totalorder %s35_s14, %s35_s14 }
  0x11   :  { %27 = vst [vmem:[#allocation5] sm:$0xff] %v25_v2  ;;  %28 = vst [vmem:[#allocation5 + $0x8] sm:$0xff] %v26_v3  ;;  %p71_p5 = scmp.ne.s32.totalorder %s35_s14, %s70_s15  ;;  %p76_p7 = scmp.lt.s32.totalorder %s70_s15, %s70_s15 }
  0x13   :  { %p77_p8 = por %p76_p7, %p75_p6 }
  0x15   :  { %p78_p9 = pnand %p77_p8, %p71_p5 }
  0x17   :  { %81 = shalt.err (!%p78_p9)
}
  0x18   :  { %40 = dma.vmem_to_hbm [thread:$0]  %s35_s14, 256, %s115_s1, [#allocation4], %s95_s9, %s95_s9, %s96_s10  }
  0x19   :  { %92 = dma.done.wait [#allocation4], 256  }
  0x1a   :  { %93 = vsyncadd [#allocation4], 4294967040 }
  0x1b   :  { %44 = vsyncpa [#allocation3], 1 }
  0x1c   :  { %45 = vsyncpa [#allocation4], 1 }

</bundles_post_ra>
